<compile_context>
chip_gen: v6e
topology: v6e:2x2x1
jax: 0.10.0
libtpu: 0.0.40
codegen_flags: <defaults>
</compile_context>

<pallas_src>
import jax
import jax.numpy as jnp
from jax.experimental import pallas as pl
from jax.experimental.pallas import tpu as pltpu


def sse_kernel(x_ref, w_ref, o_ref):
    # x_ref: (B_T, C, T) tile -- channels on sublanes, pixels on lanes.
    # w_ref: (C, 1)           -- squeezed Conv2d(C, 1, 1, bias=False) weight.
    w = w_ref[...].astype(jnp.float32)[None]                 # (1, C, 1)

    # 1x1 conv C->1 per pixel: VPU broadcast-multiply + channel (sublane)
    # reduce, done in f32.  No f32 copy of x is kept live past this reduce.
    q = jnp.sum(x_ref[...].astype(jnp.float32) * w, axis=1, keepdims=True)
    gate = jax.nn.sigmoid(q)                                  # (B_T, 1, T) f32

    # Gating multiply in x's native dtype (exact for f32 inputs; for bf16 the
    # gate is quantized to bf16, acceptable for SE gating).
    o_ref[...] = (x_ref[...] * gate.astype(x_ref.dtype)).astype(o_ref.dtype)


def sse_forward(x, w_s, *, target_block_bytes=4 * 1024 * 1024):
    """x: (N, C, H, W); w_s: (1, C)  (Conv2d(C,1,1,bias=False) weight squeezed)."""
    N, C, H, W = x.shape
    HW = H * W
    LANE = 128
    itemsize = jnp.dtype(x.dtype).itemsize

    # Spatial (lane) tile: as large as ~target_block_bytes allows, but never
    # below 512 lanes (keeps per-row DMA segments >= 2 KiB even for large C)
    # and never more than the whole lane-rounded spatial extent.
    max_hw_tile = max(
        4 * LANE, (target_block_bytes // max(1, C * itemsize)) // LANE * LANE
    )
    hw_tile = min(pl.cdiv(HW, LANE) * LANE, max_hw_tile)

    # Batch packing: fold several batch elements into one block when the
    # per-batch slab is tiny (amortizes per-grid-step overhead, fills vregs).
    per_batch_bytes = C * hw_tile * itemsize
    b_tile = 1
    for d in range(N, 0, -1):
        if N % d == 0 and d * per_batch_bytes <= target_block_bytes:
            b_tile = d
            break

    # v7x has 2 TensorCores sharing the grid via dimension_semantics: make
    # sure even a small problem yields >= 2 steps along a parallel axis by
    # splitting spatially when the batch axis collapses to a single step.
    if N // b_tile == 1 and HW > LANE and pl.cdiv(HW, hw_tile) < 2:
        hw_tile = pl.cdiv(pl.cdiv(HW, 2), LANE) * LANE

    grid = (N // b_tile, pl.cdiv(HW, hw_tile))  # ragged final spatial block is masked

    x3 = x.reshape(N, C, HW)        # free reshape (collapses trailing dims)
    w_col = w_s.reshape(C, 1)       # channels on sublanes

    # NOTE: if production C can be < 8 (f32) / < 16 (bf16), each (C, 128) slab
    # is sublane-padded to a full vreg; fold b_tile onto the sublane axis in
    # that regime.  For typical SE channel counts (64-512) this layout is fine.
    out3 = pl.pallas_call(
        sse_kernel,
        out_shape=jax.ShapeDtypeStruct((N, C, HW), x.dtype),
        grid_spec=pltpu.PrefetchScalarGridSpec(
            num_scalar_prefetch=0,
            grid=grid,
            in_specs=[
                # TODO(synk): if an xprof trace on v7x still shows exposed input
                # DMA after the block-size bump, add pipeline_mode=pl.Buffered(3)
                # on this spec only.
                pl.BlockSpec((b_tile, C, hw_tile), lambda b, s: (b, 0, s)),
                pl.BlockSpec((C, 1), lambda b, s: (0, 0)),
            ],
            out_specs=pl.BlockSpec((b_tile, C, hw_tile), lambda b, s: (b, 0, s)),
        ),
        compiler_params=pltpu.CompilerParams(
            # both grid axes are independent -> megacore / v7x 2-TC sharding
            dimension_semantics=("parallel", "parallel"),
            vmem_limit_bytes=48 * 1024 * 1024,
        ),
    )(x3, w_col)

    return out3.reshape(N, C, H, W)


def sse_reference(x, w_s):
    """Pure-JAX reference mirroring the PyTorch sSE forward."""
    q = jnp.einsum('oc,nchw->nohw', w_s, x)           # (N, 1, H, W)
    return x * jax.nn.sigmoid(q)


if __name__ == "__main__":
    key = jax.random.PRNGKey(0)
    kx1, kw1, kx2, kw2 = jax.random.split(key, 4)

    # primary check: small, lane-aligned shapes (HW = 256)
    N, C, H, W = 2, 4, 16, 16
    x = jax.random.normal(kx1, (N, C, H, W), dtype=jnp.float32)
    w_s = jax.random.normal(kw1, (1, C), dtype=jnp.float32) * 0.5
    out = jax.block_until_ready(sse_forward(x, w_s))
    ref = sse_reference(x, w_s)
    assert out.shape == (N, C, H, W)
    assert jnp.allclose(out, ref, atol=1e-5, rtol=1e-5)

    # secondary check: ragged spatial (14*14 = 196, not a multiple of 128) +
    # odd channel count -- exercises the masked final spatial block path.
    N2, C2, H2, W2 = 1, 3, 14, 14
    x2 = jax.random.normal(kx2, (N2, C2, H2, W2), dtype=jnp.float32)
    w2 = jax.random.normal(kw2, (1, C2), dtype=jnp.float32) * 0.5
    out2 = jax.block_until_ready(sse_forward(x2, w2))
    ref2 = sse_reference(x2, w2)
    assert out2.shape == (N2, C2, H2, W2)
    assert jnp.allclose(out2, ref2, atol=1e-5, rtol=1e-5)

    print("KERNEL_OK")
</pallas_src>

<mosaic_0001>
module attributes {stable_mosaic.version = 11 : i64} {
  func.func @sse_kernel(%arg0: i32, %arg1: i32, %arg2: memref<2x4x128xf32, #tpu.memory_space<vmem>>, %arg3: memref<4x1xf32, #tpu.memory_space<vmem>>, %arg4: memref<2x4x128xf32, #tpu.memory_space<vmem>>) attributes {dimension_semantics = [#tpu.dimension_semantics<parallel>, #tpu.dimension_semantics<parallel>], iteration_bounds = array<i64: 1, 2>, scalar_prefetch = 0 : i64, scratch_operands = 0 : i64, tpu.core_type = #tpu.core_type<tc>, window_params = [{transform_indices = @transform_0, window_bounds = array<i64: 2, 4, 128>}, {pipeline_mode = #tpu.pipeline_mode<synchronous>, transform_indices = @transform_1, window_bounds = array<i64: 4, 1>}, {transform_indices = @transform_2, window_bounds = array<i64: 2, 4, 128>}]} {
    %c0 = arith.constant 0 : index
    %c0_0 = arith.constant 0 : index
    %0 = vector.load %arg3[%c0, %c0_0] : memref<4x1xf32, #tpu.memory_space<vmem>>, vector<4x1xf32>
    %1 = vector.shape_cast %0 : vector<4x1xf32> to vector<1x4x1xf32>
    %c0_1 = arith.constant 0 : index
    %c0_2 = arith.constant 0 : index
    %c0_3 = arith.constant 0 : index
    %2 = vector.load %arg2[%c0_1, %c0_2, %c0_3] : memref<2x4x128xf32, #tpu.memory_space<vmem>>, vector<2x4x128xf32>
    %3 = vector.broadcast %1 : vector<1x4x1xf32> to vector<2x4x128xf32>
    %4 = arith.mulf %2, %3 : vector<2x4x128xf32>
    %cst = arith.constant dense<0.000000e+00> : vector<2x128xf32>
    %5 = vector.multi_reduction <add>, %4, %cst [1] : vector<2x4x128xf32> to vector<2x128xf32>
    %6 = vector.shape_cast %5 : vector<2x128xf32> to vector<2x1x128xf32>
    %7 = arith.negf %6 : vector<2x1x128xf32>
    %8 = math.exp %7 : vector<2x1x128xf32>
    %cst_4 = arith.constant 1.000000e+00 : f32
    %9 = vector.broadcast %cst_4 : f32 to vector<2x1x128xf32>
    %10 = arith.addf %9, %8 : vector<2x1x128xf32>
    %11 = arith.divf %9, %10 : vector<2x1x128xf32>
    %c0_5 = arith.constant 0 : index
    %c0_6 = arith.constant 0 : index
    %c0_7 = arith.constant 0 : index
    %12 = vector.load %arg2[%c0_5, %c0_6, %c0_7] : memref<2x4x128xf32, #tpu.memory_space<vmem>>, vector<2x4x128xf32>
    %13 = vector.broadcast %11 : vector<2x1x128xf32> to vector<2x4x128xf32>
    %14 = arith.mulf %12, %13 : vector<2x4x128xf32>
    %c0_8 = arith.constant 0 : index
    %c0_9 = arith.constant 0 : index
    %c0_10 = arith.constant 0 : index
    %15 = vector.load %arg4[%c0_8, %c0_9, %c0_10] : memref<2x4x128xf32, #tpu.memory_space<vmem>>, vector<2x4x128xf32>
    tpu.vector_store %arg4[%c0_8, %c0_9, %c0_10], %14 {strides = array<i32>} : memref<2x4x128xf32, #tpu.memory_space<vmem>>, vector<2x4x128xf32>,
    return
  }
  func.func @transform_0(%arg0: i32, %arg1: i32) -> (i32, i32, i32) {
    %c0_i32 = arith.constant 0 : i32
    %c0_i32_0 = arith.constant 0 : i32
    return %arg0, %c0_i32, %arg1 : i32, i32, i32
  }
  func.func @transform_1(%arg0: i32, %arg1: i32) -> (i32, i32) {
    %c0_i32 = arith.constant 0 : i32
    %c0_i32_0 = arith.constant 0 : i32
    %c0_i32_1 = arith.constant 0 : i32
    return %c0_i32, %c0_i32_0 : i32, i32
  }
  func.func @transform_2(%arg0: i32, %arg1: i32) -> (i32, i32, i32) {
    %c0_i32 = arith.constant 0 : i32
    %c0_i32_0 = arith.constant 0 : i32
    return %arg0, %c0_i32, %arg1 : i32, i32, i32
  }
}

</mosaic_0001>

<bundles_post_ra>
// kernel: tpu_custom_call.1
= control target key start
LH: loop header
LB: loop body
LE: loop exit
PB: predicated region body
PF: predicated region fallthrough
CT: control target
= control target key end

     0   :  { %7 = vsyncpa [#allocation3], 0  ;;  %s702_s0 = inlined_call_operand.hbm [shape: f32[2,4,256], index: 0, kind: input, shape index: {}]   ;;  %s703_s1 = inlined_call_operand.vmem [shape: f32[4,1], index: 1, kind: input, shape index: {}]   ;;  %s704_s2 = inlined_call_operand.hbm [shape: f32[2,4,256], index: 2, kind: output, shape index: {}]  }
   0x1   :  { %9 = vsyncpa [#allocation3 + $0x1], 0 }
   0x2   :  { %10 = vsyncpa [#allocation4], 0 }
   0x3   :  { %12 = vsyncpa [#allocation4 + $0x1], 0  ;;  %s551_s9 = smov 0   ;;  %s553_s10 = smov 0  }
   0x4   :  { %s555_s11 = smov 0   ;;  %s557_s12 = smov 0  }
   0x5   :  { %s559_s13 = smov 0   ;;  %s561_s14 = smov 0  }
   0x6 LB: > { %s324_s15 = sadd.s32 4294967295, %s525_s14   ;;  %s325_s16 = sadd.s32 4294967294, %s525_s14   ;;  %s525_s14 = sphi %s561_s14, %s18_s14   ;;  %s521_s13 = sphi %s559_s13, %s715_s13   ;;  %s517_s12 = sphi %s557_s12, %s714_s12   ;;  %s513_s11 = sphi %s555_s11, %s713_s11   ;;  %s509_s10 = sphi %s553_s10, %s712_s10   ;;  %s505_s9 = sphi %s551_s9, %s711_s9  }
   0x7   : > { %s27_s17 = sadd.s32 1, %s521_s13  ;;  %s39_s18 = sadd.s32 1, %s513_s11 }
   0x8   : > { %p28_p0 = scmp.ge.s32.totalorder %s27_s17, 2  ;;  %p46_p1 = scmp.ne.s32.totalorder %s513_s11, %s509_s10 }
   0x9   : > { %p47_p2 = scmp.eq.s32.totalorder %s525_s14, 0  ;;  %p52_p3 = scmp.ne.s32.totalorder %s509_s10, %s505_s9 }
   0xa   : > { %s717_s17 = smov (%p28_p0, %s27_s17), 0  ;;  %p53_p5 = scmp.eq.s32.totalorder %s324_s15, 0 }
   0xb   : > { %p592_p4 = por %p47_p2, %p46_p1  ;;  %s35_s20 = ssub.s32 %s521_s13, %s717_s17 }
   0xc   : > { %p99_p6 = scmp.eq.s32.totalorder %s324_s15, 1  ;;  %p37_p7 = scmp.eq.s32.totalorder %s35_s20, 0 }
   0xd   : > { %p598_p8 = por %p53_p5, %p52_p3  ;;  %p105_p10 = scmp.eq.s32.totalorder %s325_s16, 1 }
   0xe   : > { %p602_p9 = por %p99_p6, %p46_p1  ;;  %p351_p13 = scmp.lt.s32.totalorder %s525_s14, 2 }
   0xf   : > { %s607_s23 = scalar_select %p37_p7, %s513_s11, %s39_s18  }
  0x10   : > { %p609_p11 = por %p105_p10, %p52_p3  ;;  %s128_s25 = sand.u32 1, %s513_s11  }
  0x11   : > { %s328_s26 = sshll.u32 %s128_s25, 3  ;;  %s329_s27 = sshll.u32 %s521_s13, 6 }
  0x12   : > { %s140_s30 = scalar_lea.hbm %s702_s0, %s329_s27  ;;  %s132_s3 = scalar_lea.vmem [#allocation2], %s328_s26 }
  0x13   : > { %s141_s4 = sshll.u32 %s132_s3, 4  ;;  %p622_p0 = pnand %p351_p13, %p592_p4  ;;  %s142_s4 = int_to_ptr.vmem [resolvable:$true] %s141_s4 }
  0x14   : > { %s129_s6 = scalar_lea.sflag [#allocation3], %s128_s25  ;;  %s430_s7 = scalar_lea.vmem %s142_s4, 128 }
  0x15   : > { %p419_p1 = pneg %p622_p0  ;;  %p431_p2 = scmp.ne.s32.totalorder %s142_s4, %s430_s7 }
  0x16   : > { %s527_s8 = smov [#allocation2]  }
  0x17   : > { %p433_p3 = pnand %p431_p2, %p419_p1  ;;  %s435_s15 = sshll.u32 %s527_s8, 4  ;;  %s436_s15 = int_to_ptr.vmem [resolvable:$false] %s435_s15 }
  0x18   : > { %s437_s16 = scalar_lea.vmem %s436_s15, 256  ;;  %p438_p6 = scmp.lt.s32.totalorder %s142_s4, %s436_s15 }
  0x19   : > { %p434_p5 = pneg %p433_p3  ;;  %p439_p7 = scmp.lt.s32.totalorder %s437_s16, %s430_s7 }
  0x1b   : > { %p440_p10 = por %p439_p7, %p438_p6 }
  0x1d   : > { %p441_p12 = pnand %p440_p10, %p434_p5 }
  0x1f   : > { %444 = shalt.err (!%p441_p12)
}
  0x20   : > { %s528_s18 = smov 128   ;;  %s529_s19 = smov 64  }
  0x21   : > { %s530_s20 = smov 4   ;;  %p330_p4 = scmp.ge.s32.totalorder %s525_s14, 1 }
  0x22   : > { %346 = dma.hbm_to_vmem [thread:$0]  (!%p622_p0), %s140_s30, 128, %s142_s4, %s129_s6, %s528_s18, %s529_s19, %s530_s20  }
  0x23   : > { %p149_p13 = scmp.lt.s32.totalorder %s525_s14, 3 }
  0x25   : > { %p150_p1 = pnand %p330_p4, %p149_p13 }
  0x26   : > { %s633_s25 = sand.u32 (!%p150_p1), 1, %s509_s10  }
  0x27   : > { %153 = sbr.rel (%p150_p1) target bundleno = 236 (0xec), region = 28  ;;  %s331_s26 = sshll.u32 (!%p150_p1), %s633_s25, 3 }
  0x28   : > { %s156_s27 = scalar_lea.sflag (!%p150_p1), [#allocation3], %s633_s25  ;;  %s159_s28 = scalar_lea.vmem (!%p150_p1), [#allocation2], %s331_s26 }
  0x2c   : > { %496 = dma.done.wait (%p598_p8), %s156_s27, 128  }
  0x2d   : > { %498 = vsyncadd (%p598_p8), %s156_s27, 4294967168  ;;  %v531_v0 = vmov 0   ;;  %v182_v1 = vld [vmem:[%s703_s1] sm:$0xf]  ;;  %v184_v3 = vld [vmem:[%s159_s28 + $0x4] sm:$0xf] }
  0x2e   : > { %408 = vset.pattern.permute.xlu0 %v531_v0  ;;  %v183_v2 = vld [vmem:[%s159_s28] sm:$0xf]  ;;  %vm192_vm0 = vcmask 1043456   ;;  %s179_s21 = scalar_lea.vmem [#allocation5], %s331_s26  ;;  %s336_s4 = sshll.u32 %s517_s12, 6 }
  0x2f   : > { %187 = vperm.xlu0 %408, %v182_v1   ;;  %s239_s3 = sshll.u32 %s179_s21, 4  ;;  %s654_s7 = scalar_lea.hbm %s704_s2, %s336_s4  ;;  %s649_s3 = int_to_ptr.vmem [resolvable:$true] %s239_s3 }
  0x30   : > { %s224_s8 = scalar_lea.sflag [#allocation4], %s633_s25  ;;  %s445_s15 = scalar_lea.vmem %s649_s3, 128 }
  0x31   : > { %p446_p8 = scmp.ne.s32.totalorder %s649_s3, %s445_s15  ;;  %s532_s12 = smov [#allocation5]  }
  0x32   : > { %s449_s16 = sshll.u32 %s532_s12, 4  ;;  %s450_s16 = int_to_ptr.vmem [resolvable:$false] %s449_s16 }
  0x33   : > { %p447_p12 = pnand %p446_p8, %p602_p9  ;;  %s451_s18 = scalar_lea.vmem %s450_s16, 256 }
  0x34   : > { %p452_p2 = scmp.lt.s32.totalorder %s649_s3, %s450_s16  ;;  %p453_p3 = scmp.lt.s32.totalorder %s451_s18, %s445_s15 }
  0x35   : > { %p448_p0 = pneg %p447_p12 }
  0x36   : > { %p454_p5 = por %p453_p3, %p452_p2 }
  0x38   : > { %p455_p6 = pnand %p454_p5, %p448_p0 }
  0xaa   : > { %v188_v4 = vpop.permute.xlu0 %187 }
  0xab   : > { %v190_v5 = vmul.f32 %v188_v4, %v183_v2  ;;  %v191_v6 = vmul.f32 %v188_v4, %v184_v3 }
  0xad   : > { %v193_v7 = vsel %vm192_vm0, %v190_v5, 0.0  ;;  %v200_v8 = vsel %vm192_vm0, %v191_v6, 0.0 }
  0xae   : > { %v194_v9 = vrot.slane %v193_v7, 4  ;;  %v201_v10 = vrot.slane %v200_v8, 4 }
  0xb0   : > { %v195_v11 = vadd.f32 %v194_v9, %v193_v7  ;;  %v202_v12 = vadd.f32 %v201_v10, %v200_v8 }
  0xb2   : > { %v196_v13 = vrot.slane %v195_v11, 2  ;;  %v203_v14 = vrot.slane %v202_v12, 2 }
  0xb4   : > { %v197_v15 = vadd.f32 %v196_v13, %v195_v11  ;;  %v204_v16 = vadd.f32 %v203_v14, %v202_v12 }
  0xb6   : > { %v198_v17 = vrot.slane %v197_v15, 1  ;;  %v205_v18 = vrot.slane %v204_v16, 1 }
  0xb8   : > { %v199_v19 = vadd.f32 %v198_v17, %v197_v15  ;;  %v206_v20 = vadd.f32 %v205_v18, %v204_v16 }
  0xba   : > { %v333_v21 = vmul.f32 -1.442695, %v199_v19  ;;  %v334_v22 = vmul.f32 -1.442695, %v206_v20 }
  0xbc   : > { %409 = vpow2.f32 %v333_v21 }
  0xbd   : > { %411 = vpow2.f32 %v334_v22 }
  0xc9   : > { %v410_v23 = vpop.eup %409 }
  0xca   : > { %v412_v24 = vpop.eup %411  ;;  %v213_v25 = vadd.f32 1.0, %v410_v23 }
  0xcb   : > { %v214_v26 = vadd.f32 1.0, %v412_v24 }
  0xcc   : > { %413 = vrcp.f32 %v213_v25 }
  0xcd   : > { %415 = vrcp.f32 %v214_v26 }
  0xd9   : > { %v414_v27 = vpop.eup %413 }
  0xda   : > { %v416_v28 = vpop.eup %415  ;;  %v219_v29 = vmul.f32 %v414_v27, %v183_v2 }
  0xdb   : > { %v220_v30 = vmul.f32 %v416_v28, %v184_v3 }
  0xdc   : > { %221 = vst [vmem:[%s179_s21] sm:$0xf] %v219_v29 }
  0xdd   : > { %222 = vst [vmem:[%s179_s21 + $0x4] sm:$0xf] %v220_v30 }
  0xde   : > { %458 = shalt.err (!%p455_p6)
}
  0xdf   : > { %s459_s19 = scalar_lea.hbm %s654_s7, 128  ;;  %s463_s27 = scalar_lea.hbm %s704_s2, 256 }
  0xe0   : > { %p460_p7 = scmp.ne.s32.totalorder %s654_s7, %s459_s19  ;;  %p464_p13 = scmp.lt.s32.totalorder %s654_s7, %s704_s2 }
  0xe1   : > { %p465_p1 = scmp.lt.s32.totalorder %s463_s27, %s459_s19 }
  0xe2   : > { %p461_p10 = pnand %p460_p7, %p602_p9 }
  0xe3   : > { %p466_p8 = por %p465_p1, %p464_p13 }
  0xe4   : > { %p462_p4 = pneg %p461_p10 }
  0xe6   : > { %p467_p12 = pnand %p466_p8, %p462_p4 }
  0xe8   : > { %470 = shalt.err (!%p467_p12)
}
  0xe9   : > { %s533_s30 = smov 64   ;;  %s534_s21 = smov 128  }
  0xea   : > { %s535_s4 = smov 4  }
  0xeb   : > { %341 = dma.vmem_to_hbm [thread:$0]  (%p602_p9), %s649_s3, 128, %s654_s7, %s224_s8, %s533_s30, %s534_s21, %s535_s4  }
  0xec PF: > { %s254_s5 = sand.u32 1, %s505_s9   ;;  %p710_p0 = scmp.ge.s32.totalorder %s525_s14, 2 }
  0xed   : > { %s255_s6 = scalar_lea.sflag [#allocation4], %s254_s5 }
  0xee   : > { %p348_p2 = pnand %p710_p0, %p609_p11 }
  0xf0   : > { %p349_p3 = pneg %p348_p2 }
  0xf2   : > { %500 = dma.done.wait (%p349_p3), %s255_s6, 128  }
  0xf3   : > { %502 = vsyncadd (%p349_p3), %s255_s6, 4294967168  ;;  %s18_s14 = sadd.s32 1, %s525_s14   ;;  %s711_s9 = smov %s509_s10 }
  0xf4   : > { %p15_p5 = scmp.ge.s32.totalorder %s18_s14, 4   ;;  %s712_s10 = smov %s513_s11 }
  0xf5   : > { %s713_s11 = smov %s607_s23  ;;  %s714_s12 = smov %s521_s13 }
  0xf6   : > { %s715_s13 = smov %s717_s17  ;;  %17 = sbr.rel (!%p15_p5) target bundleno = 6 (0x6), region = 73 }
  0xfb   :  { %260 = vsyncpa [#allocation3], 1 }
  0xfc   :  { %262 = vsyncpa [#allocation3 + $0x1], 1 }
  0xfd   :  { %263 = vsyncpa [#allocation4], 1 }
  0xfe   :  { %265 = vsyncpa [#allocation4 + $0x1], 1 }

</bundles_post_ra>
